<compile_context>
chip_gen: v5e
topology: v5e:2x2
jax: 0.10.0
libtpu: 0.0.40
codegen_flags: <defaults>
</compile_context>

<pallas_src>
import functools

import numpy as np
import jax
import jax.numpy as jnp
from jax import lax
from jax.experimental import pallas as pl
from jax.experimental.pallas import tpu as pltpu

RESIZE = 224          # F.interpolate target size in the reference module
POOL = 7              # synthetic encoder: adaptive avg-pool output size
EMBED_DIM = 128       # synthetic stand-in for CLIP RN50's 1024-d embedding
NUM_CLASSES = 10      # cifar10 default
NORM_EPS = 1e-12      # guards rsqrt against all-zero feature rows
CLASS_LANE = 128      # pad class dim to lane width -> unmasked vst
MAX_BLOCK_B = 512     # batch rows per grid step (v5e/v6e streaming sweet spot)
MAX_TK = 2048         # reduction-axis tile; keeps per-step VMEM small at real K


# ----------------------------------------------------------------------------
# Bicubic / avg-pool operator matrices (host-side, shape-dependent constants,
# cached so repeated init / reference calls never re-run the Python loops).
# bicubic_matrix matches torch.nn.functional.interpolate(mode="bicubic",
# align_corners=False, a=-0.75, antialias=False) with clamped border indices.
# ----------------------------------------------------------------------------
def _cubic_weight(x, a=-0.75):
    x = abs(float(x))
    if x <= 1.0:
        return (a + 2.0) * x**3 - (a + 3.0) * x**2 + 1.0
    if x < 2.0:
        return a * x**3 - 5.0 * a * x**2 + 8.0 * a * x - 4.0 * a
    return 0.0


@functools.lru_cache(maxsize=None)
def bicubic_matrix(in_size: int, out_size: int) -> np.ndarray:
    scale = in_size / out_size
    m = np.zeros((out_size, in_size), dtype=np.float64)
    for i in range(out_size):
        src = (i + 0.5) * scale - 0.5
        i0 = int(np.floor(src))
        t = src - i0
        for k in (-1, 0, 1, 2):
            idx = min(max(i0 + k, 0), in_size - 1)   # replicate border (clamp)
            m[i, idx] += _cubic_weight(k - t)
    return m


@functools.lru_cache(maxsize=None)
def avgpool_matrix(in_size: int, out_size: int) -> np.ndarray:
    m = np.zeros((out_size, in_size), dtype=np.float64)
    stride = in_size // out_size
    for i in range(out_size):
        m[i, i * stride:(i + 1) * stride] = 1.0 / stride
    return m


def _round_up(x: int, m: int) -> int:
    return ((x + m - 1) // m) * m


# ----------------------------------------------------------------------------
# Host-side weight folding (done ONCE at init, analogous to register_buffer).
# ----------------------------------------------------------------------------
def fold_params(w_enc, zeroshot_weights, C, H, W):
    """Compose bicubic resize + 7x7 avg-pool + linear projection into one
    (C*H*W, D) matrix; pad the zero-shot head so the kernel's logits store is
    lane-dense (last dim a multiple of 128)."""
    D = w_enc.shape[-1]
    num_classes = zeroshot_weights.shape[0]
    class_pad = _round_up(num_classes, CLASS_LANE)

    a = jnp.asarray(avgpool_matrix(RESIZE, POOL) @ bicubic_matrix(H, RESIZE),
                    jnp.float32)                                    # (7, H)
    b = jnp.asarray(avgpool_matrix(RESIZE, POOL) @ bicubic_matrix(W, RESIZE),
                    jnp.float32)                                    # (7, W)
    w4 = w_enc.reshape(C, POOL, POOL, D).astype(jnp.float32)
    # W_fold[(c,h,w), d] = sum_{o,j} a[o,h] * b[j,w] * w_enc[(c,o,j), d]
    w_fold = jnp.einsum('oh,jw,cojd->chwd', a, b, w4).reshape(C * H * W, D)

    zsw_pad = jnp.zeros((D, class_pad), jnp.float32)
    zsw_pad = zsw_pad.at[:, :num_classes].set(
        zeroshot_weights.astype(jnp.float32).T)                     # (D, class_pad)
    return w_fold, zsw_pad


# ----------------------------------------------------------------------------
# Tiling helpers
# ----------------------------------------------------------------------------
def _choose_tk(K: int, max_tk: int = MAX_TK) -> int:
    """Reduction-axis tile: full K when small, else the largest multiple of
    128 <= max_tk dividing K; otherwise fall back to max_tk (K gets padded)."""
    if K <= max_tk:
        return K
    for tk in range(max_tk, 127, -128):
        if K % tk == 0:
            return tk
    return max_tk


def _choose_block_b(b_pad: int, max_block: int = MAX_BLOCK_B) -> int:
    """>=2 batch grid steps once b_pad >= 16 (keeps both v7x TensorCores busy);
    capped at max_block so per-step VMEM stays small on every generation."""
    bb = max(8, 8 * ((b_pad // 2) // 8))
    return min(bb, max_block, b_pad)


# ----------------------------------------------------------------------------
# Fused Pallas kernel: folded encoder matmul (K-tiled accumulation)
#                      -> L2 normalize -> zero-shot head.
# ----------------------------------------------------------------------------
def _clip_fused_kernel(x_ref, wf_ref, zsw_ref, o_ref, acc_ref):
    # x_ref:   (block_b, tk)        flattened image rows, one K slice
    # wf_ref:  (tk, D)              folded resize+pool+projection slice
    # zsw_ref: (D, class_pad)       zero-shot weights, transposed & zero-padded
    # o_ref:   (block_b, class_pad) padded logits (lane-dense store)
    # acc_ref: (block_b, D) f32     feature accumulator across K tiles
    k = pl.program_id(1)

    @pl.when(k == 0)
    def _():
        acc_ref[...] = jnp.zeros_like(acc_ref)

    acc_ref[...] += jnp.dot(x_ref[...], wf_ref[...],
                            preferred_element_type=jnp.float32)

    @pl.when(k == pl.num_programs(1) - 1)
    def _():
        feats = acc_ref[...]                                        # (bb, D) f32
        sumsq = jnp.sum(feats * feats, axis=-1, keepdims=True)
        feats = feats * lax.rsqrt(sumsq + NORM_EPS)                 # features / norm
        # einsum('bd, cd -> bc') == feats @ zeroshot_weights.T
        o_ref[...] = jnp.dot(feats.astype(zsw_ref.dtype), zsw_ref[...],
                             preferred_element_type=jnp.float32)


# ----------------------------------------------------------------------------
# Init-time builder: fold weights once, return a jitted forward closure.
# ----------------------------------------------------------------------------
def make_clip_forward(w_enc, zeroshot_weights, C, H, W, *,
                      compute_dtype=jnp.bfloat16, block_b=None):
    """Folds resize+pool+projection into W_fold ONCE and returns a jitted
    forward(images: f32[B, C, H, W]) -> logits f32[B, num_classes]."""
    w_fold, zsw_pad = fold_params(w_enc, zeroshot_weights, C, H, W)
    K, D = w_fold.shape
    num_classes = zeroshot_weights.shape[0]
    class_pad = zsw_pad.shape[-1]

    tk = _choose_tk(K)
    k_pad = _round_up(K, tk)
    if k_pad != K:                       # rare fallback; zero rows add nothing
        w_fold = jnp.pad(w_fold, ((0, k_pad - K), (0, 0)))

    # bf16 operands (f32 accumulation in-kernel): halves HBM bytes, native MXU.
    w_fold_c = w_fold.astype(compute_dtype)
    zsw_c = zsw_pad.astype(compute_dtype)
    itemsize = jnp.dtype(compute_dtype).itemsize

    @jax.jit
    def forward(images):
        B = images.shape[0]
        x2d = images.reshape(B, K)       # row-major NCHW -> (B, C*H*W), no copy

        b_pad = max(8, _round_up(B, 8))  # unmasked sublane tiles for tiny B
        if (b_pad, k_pad) != (B, K):
            x2d = jnp.pad(x2d, ((0, b_pad - B), (0, k_pad - K)))
        x2d = x2d.astype(compute_dtype)

        bb = block_b if block_b is not None else _choose_block_b(b_pad)
        grid = (pl.cdiv(b_pad, bb), pl.cdiv(k_pad, tk))

        cost = pl.CostEstimate(
            flops=2 * b_pad * k_pad * D + 2 * b_pad * D * class_pad + 3 * b_pad * D,
            transcendentals=b_pad,
            bytes_accessed=(b_pad * k_pad + k_pad * D + D * class_pad) * itemsize
                           + b_pad * class_pad * 4)

        logits_pad = pl.pallas_call(
            _clip_fused_kernel,
            out_shape=jax.ShapeDtypeStruct((b_pad, class_pad), jnp.float32),
            grid_spec=pltpu.PrefetchScalarGridSpec(
                num_scalar_prefetch=0,
                grid=grid,
                in_specs=[
                    pl.BlockSpec((bb, tk), lambda i, k: (i, k)),        # image rows
                    pl.BlockSpec((tk, D), lambda i, k: (k, 0)),         # W_fold slice
                    pl.BlockSpec((D, class_pad), lambda i, k: (0, 0)),  # zs head (tiny, resident)
                ],
                out_specs=pl.BlockSpec((bb, class_pad), lambda i, k: (i, 0)),
                scratch_shapes=[pltpu.VMEM((bb, D), jnp.float32)],      # feature acc
            ),
            # Batch axis parallel (shards across v7x's 2 TCs when grid>1),
            # reduction axis arbitrary.
            compiler_params=pltpu.CompilerParams(
                dimension_semantics=("parallel", "arbitrary")),
            cost_estimate=cost,
        )(x2d, w_fold_c, zsw_c)

        return logits_pad[:B, :num_classes]

    return forward


# ----------------------------------------------------------------------------
# Synthetic parameters + pure-JAX reference (unfused pipeline) for validation.
# ----------------------------------------------------------------------------
def init_params(key, channels=3):
    k_enc, k_zsw = jax.random.split(key)
    feat_dim = channels * POOL * POOL
    w_enc = jax.random.normal(k_enc, (feat_dim, EMBED_DIM), jnp.float32)
    w_enc = w_enc / jnp.sqrt(jnp.float32(feat_dim))
    # zeroshot_weights buffer: (num_classes, D), unit-norm rows (as in CLIP)
    zsw = jax.random.normal(k_zsw, (NUM_CLASSES, EMBED_DIM), jnp.float32)
    zsw = zsw / jnp.linalg.norm(zsw, axis=-1, keepdims=True)
    return w_enc, zsw


def _reference_forward(images, w_enc, zeroshot_weights):
    """Unfused pure-JAX reference: explicit bicubic resize -> 7x7 avg-pool ->
    projection -> L2 normalize -> zero-shot logits."""
    B, C, H, W = images.shape
    wy = jnp.asarray(bicubic_matrix(H, RESIZE), jnp.float32)     # (224, H)
    wx = jnp.asarray(bicubic_matrix(W, RESIZE), jnp.float32)     # (224, W)
    p7 = jnp.asarray(avgpool_matrix(RESIZE, POOL), jnp.float32)  # (7, 224)
    x = images.reshape(B * C, H, W)
    resized = jnp.einsum('oh,phw,xw->pox', wy, x, wx)            # (B*C, 224, 224)
    pooled = jnp.einsum('ih,phw,jw->pij', p7, resized, p7)       # (B*C, 7, 7)
    feats = pooled.reshape(B, -1) @ w_enc
    feats = feats / jnp.linalg.norm(feats, axis=-1, keepdims=True)
    return feats @ zeroshot_weights.T


if __name__ == "__main__":
    key = jax.random.PRNGKey(0)
    k_x, k_p = jax.random.split(key)

    B, C, H, W = 2, 3, 16, 16            # small CIFAR-like NCHW input
    x = jax.random.normal(k_x, (B, C, H, W), jnp.float32)
    w_enc, zsw = init_params(k_p, channels=C)

    # Init-time folding (once), jitted forward closures.
    fwd_bf16 = make_clip_forward(w_enc, zsw, C, H, W)                         # perf path
    fwd_f32 = make_clip_forward(w_enc, zsw, C, H, W, compute_dtype=jnp.float32)

    logits = jax.block_until_ready(fwd_bf16(x))
    assert logits.shape == (B, NUM_CLASSES)
    assert bool(jnp.all(jnp.isfinite(logits)))

    ref = jax.block_until_ready(_reference_forward(x, w_enc, zsw))

    # f32-operand kernel: folding/tiling/normalization are exact -> tight check.
    logits_f32 = jax.block_until_ready(fwd_f32(x))
    err_f32 = float(jnp.max(jnp.abs(logits_f32 - ref)))
    assert err_f32 < 1e-3, f"f32 path mismatch vs reference: {err_f32}"

    # bf16-operand / f32-accumulation path: relaxed tolerance (input rounding).
    err_bf16 = float(jnp.max(jnp.abs(logits - ref)))
    assert err_bf16 < 2e-2, f"bf16 path mismatch vs reference: {err_bf16}"

    print("KERNEL_OK")
</pallas_src>

<mosaic_0001>
module attributes {stable_mosaic.version = 11 : i64} {
  func.func @_clip_fused_kernel(%arg0: i32, %arg1: i32, %arg2: memref<8x768xbf16, #tpu.memory_space<vmem>>, %arg3: memref<768x128xbf16, #tpu.memory_space<vmem>>, %arg4: memref<128x128xbf16, #tpu.memory_space<vmem>>, %arg5: memref<8x128xf32, #tpu.memory_space<vmem>>, %arg6: memref<8x128xf32, #tpu.memory_space<vmem>>) attributes {dimension_semantics = [#tpu.dimension_semantics<parallel>, #tpu.dimension_semantics<arbitrary>], iteration_bounds = array<i64: 1, 1>, scalar_prefetch = 0 : i64, scratch_operands = 1 : i64, tpu.core_type = #tpu.core_type<tc>, window_params = [{transform_indices = @transform_0, window_bounds = array<i64: 8, 768>}, {transform_indices = @transform_1, window_bounds = array<i64: 768, 128>}, {pipeline_mode = #tpu.pipeline_mode<synchronous>, transform_indices = @transform_2, window_bounds = array<i64: 128, 128>}, {transform_indices = @transform_3, window_bounds = array<i64: 8, 128>}]} {
    %c0_i32 = arith.constant 0 : i32
    %0 = arith.cmpi eq, %arg1, %c0_i32 : i32
    %1 = arith.extui %0 : i1 to i32
    %c0_i32_0 = arith.constant 0 : i32
    %2 = arith.cmpi ne, %1, %c0_i32_0 : i32
    scf.if %2 {
      %cst_10 = arith.constant 0.000000e+00 : f32
      %12 = vector.broadcast %cst_10 : f32 to vector<8x128xf32>
      %c0_11 = arith.constant 0 : index
      %c0_12 = arith.constant 0 : index
      %13 = vector.load %arg6[%c0_11, %c0_12] : memref<8x128xf32, #tpu.memory_space<vmem>>, vector<8x128xf32>
      tpu.vector_store %arg6[%c0_11, %c0_12], %12 {strides = array<i32>} : memref<8x128xf32, #tpu.memory_space<vmem>>, vector<8x128xf32>,
    } else {
    }
    %c0 = arith.constant 0 : index
    %c0_1 = arith.constant 0 : index
    %3 = vector.load %arg6[%c0, %c0_1] : memref<8x128xf32, #tpu.memory_space<vmem>>, vector<8x128xf32>
    %c0_2 = arith.constant 0 : index
    %c0_3 = arith.constant 0 : index
    %4 = vector.load %arg2[%c0_2, %c0_3] : memref<8x768xbf16, #tpu.memory_space<vmem>>, vector<8x768xbf16>
    %c0_4 = arith.constant 0 : index
    %c0_5 = arith.constant 0 : index
    %5 = vector.load %arg3[%c0_4, %c0_5] : memref<768x128xbf16, #tpu.memory_space<vmem>>, vector<768x128xbf16>
    %cst = arith.constant dense<0.000000e+00> : vector<8x128xf32>
    %6 = tpu.matmul %4, %5, %cst {dimension_numbers = #tpu.dot_dimension_numbers<[1], [0], [0], [1], [0, 0, 1, 1], [], []>} : vector<8x768xbf16>, vector<768x128xbf16>, vector<8x128xf32> -> vector<8x128xf32>
    %7 = arith.addf %3, %6 : vector<8x128xf32>
    %c0_6 = arith.constant 0 : index
    %c0_7 = arith.constant 0 : index
    %8 = vector.load %arg6[%c0_6, %c0_7] : memref<8x128xf32, #tpu.memory_space<vmem>>, vector<8x128xf32>
    tpu.vector_store %arg6[%c0_6, %c0_7], %7 {strides = array<i32>} : memref<8x128xf32, #tpu.memory_space<vmem>>, vector<8x128xf32>,
    %c0_i32_8 = arith.constant 0 : i32
    %9 = arith.cmpi eq, %arg1, %c0_i32_8 : i32
    %10 = arith.extui %9 : i1 to i32
    %c0_i32_9 = arith.constant 0 : i32
    %11 = arith.cmpi ne, %10, %c0_i32_9 : i32
    scf.if %11 {
      %c0_10 = arith.constant 0 : index
      %c0_11 = arith.constant 0 : index
      %12 = vector.load %arg6[%c0_10, %c0_11] : memref<8x128xf32, #tpu.memory_space<vmem>>, vector<8x128xf32>
      %13 = arith.mulf %12, %12 : vector<8x128xf32>
      %cst_12 = arith.constant dense<0.000000e+00> : vector<8xf32>
      %14 = vector.multi_reduction <add>, %13, %cst_12 [1] : vector<8x128xf32> to vector<8xf32>
      %15 = vector.shape_cast %14 : vector<8xf32> to vector<8x1xf32>
      %cst_13 = arith.constant 9.99999996E-13 : f32
      %16 = vector.broadcast %cst_13 : f32 to vector<8x1xf32>
      %17 = arith.addf %15, %16 : vector<8x1xf32>
      %18 = math.rsqrt %17 : vector<8x1xf32>
      %19 = vector.broadcast %18 : vector<8x1xf32> to vector<8x128xf32>
      %20 = arith.mulf %12, %19 : vector<8x128xf32>
      %21 = arith.truncf %20 : vector<8x128xf32> to vector<8x128xbf16>
      %c0_14 = arith.constant 0 : index
      %c0_15 = arith.constant 0 : index
      %22 = vector.load %arg4[%c0_14, %c0_15] : memref<128x128xbf16, #tpu.memory_space<vmem>>, vector<128x128xbf16>
      %cst_16 = arith.constant dense<0.000000e+00> : vector<8x128xf32>
      %23 = tpu.matmul %21, %22, %cst_16 {dimension_numbers = #tpu.dot_dimension_numbers<[1], [0], [0], [1], [0, 0, 1, 1], [], []>} : vector<8x128xbf16>, vector<128x128xbf16>, vector<8x128xf32> -> vector<8x128xf32>
      %c0_17 = arith.constant 0 : index
      %c0_18 = arith.constant 0 : index
      %24 = vector.load %arg5[%c0_17, %c0_18] : memref<8x128xf32, #tpu.memory_space<vmem>>, vector<8x128xf32>
      tpu.vector_store %arg5[%c0_17, %c0_18], %23 {strides = array<i32>} : memref<8x128xf32, #tpu.memory_space<vmem>>, vector<8x128xf32>,
    } else {
    }
    return
  }
  func.func @transform_0(%arg0: i32, %arg1: i32) -> (i32, i32) {
    %c0_i32 = arith.constant 0 : i32
    return %arg0, %arg1 : i32, i32
  }
  func.func @transform_1(%arg0: i32, %arg1: i32) -> (i32, i32) {
    %c0_i32 = arith.constant 0 : i32
    %c0_i32_0 = arith.constant 0 : i32
    return %arg1, %c0_i32 : i32, i32
  }
  func.func @transform_2(%arg0: i32, %arg1: i32) -> (i32, i32) {
    %c0_i32 = arith.constant 0 : i32
    %c0_i32_0 = arith.constant 0 : i32
    %c0_i32_1 = arith.constant 0 : i32
    return %c0_i32, %c0_i32_0 : i32, i32
  }
  func.func @transform_3(%arg0: i32, %arg1: i32) -> (i32, i32) {
    %c0_i32 = arith.constant 0 : i32
    %c0_i32_0 = arith.constant 0 : i32
    return %arg0, %c0_i32 : i32, i32
  }
}

</mosaic_0001>

<bundles_post_ra>
// kernel: forward.1
= control target key start
LH: loop header
LB: loop body
LE: loop exit
PB: predicated region body
PF: predicated region fallthrough
CT: control target
= control target key end

     0   :  { %8 = vsyncpa [#allocation4], 0  ;;  %s938_s15 = smov [#allocation3]   ;;  %s939_s17 = smov 64   ;;  %s1000_s0 = inlined_call_operand.vmem [shape: bf16[8,768], index: 0, kind: input, shape index: {}]   ;;  %s1001_s1 = inlined_call_operand.hbm [shape: bf16[768,128], index: 1, kind: input, shape index: {}]   ;;  %s1002_s2 = inlined_call_operand.vmem [shape: bf16[128,128], index: 2, kind: input, shape index: {}]   ;;  %s1003_s3 = inlined_call_operand.vmem [shape: f32[8,128], index: 3, kind: output, shape index: {}]  }
   0x1   :  { %s15_s14 = sshll.u32 %s1001_s1, 4  ;;  %s17_s16 = sshll.u32 %s938_s15, 4  ;;  %s16_s14 = int_to_ptr.hbm [resolvable:$true] %s15_s14  ;;  %s18_s16 = int_to_ptr.vmem [resolvable:$true] %s17_s16 }
   0x2   :  { %s940_s18 = smov 4  }
   0x3   :  { %23 = dma.hbm_to_vmem [thread:$0]  %s16_s14, 6144, %s18_s16, [#allocation4], %s939_s17, %s939_s17, %s940_s18  }
   0x4   :  { %936 = dma.done.wait [#allocation4], 6144  }
   0x5   :  { %937 = vsyncadd [#allocation4], 4294961152  ;;  %v858_v0 = vld [vmem:[#allocation3 + $0x38] sm:$0xff]  ;;  %v857_v2 = vld [vmem:[#allocation3 + $0x30] sm:$0xff] }
   0x6   :  { %v866_v1 = vld [vmem:[#allocation3 + $0x78] sm:$0xff]  ;;  %444 = vmatpush.bf16.msra.mxu0 %v858_v0  ;;  %v865_v3 = vld [vmem:[#allocation3 + $0x70] sm:$0xff]  ;;  %v856_v8 = vld [vmem:[#allocation3 + $0x28] sm:$0xff] }
   0x7   :  { %457 = vmatpush.bf16.msra.mxu1 %v866_v1  ;;  %v874_v4 = vld [vmem:[#allocation3 + $0xb8] sm:$0xff]  ;;  %v873_v6 = vld [vmem:[#allocation3 + $0xb0] sm:$0xff]  ;;  %v864_v9 = vld [vmem:[#allocation3 + $0x68] sm:$0xff] }
   0x8   :  { %v882_v5 = vld [vmem:[#allocation3 + $0xf8] sm:$0xff]  ;;  %470 = vmatpush.bf16.msra.mxu2 %v874_v4  ;;  %v881_v7 = vld [vmem:[#allocation3 + $0xf0] sm:$0xff]  ;;  %v872_v10 = vld [vmem:[#allocation3 + $0xa8] sm:$0xff] }
   0x9   :  { %483 = vmatpush.bf16.msra.mxu3 %v882_v5  ;;  %v880_v11 = vld [vmem:[#allocation3 + $0xe8] sm:$0xff]  ;;  %v855_v12 = vld [vmem:[#allocation3 + $0x20] sm:$0xff]  ;;  %v854_v16 = vld [vmem:[#allocation3 + $0x18] sm:$0xff] }
   0xa   :  { %445 = vmatpush.bf16.msra.mxu0 %v857_v2  ;;  %v863_v13 = vld [vmem:[#allocation3 + $0x60] sm:$0xff]  ;;  %v862_v17 = vld [vmem:[#allocation3 + $0x58] sm:$0xff]  ;;  %v853_v20 = vld [vmem:[#allocation3 + $0x10] sm:$0xff] }
   0xb   :  { %458 = vmatpush.bf16.msra.mxu1 %v865_v3  ;;  %v871_v14 = vld [vmem:[#allocation3 + $0xa0] sm:$0xff]  ;;  %v870_v18 = vld [vmem:[#allocation3 + $0x98] sm:$0xff]  ;;  %v861_v21 = vld [vmem:[#allocation3 + $0x50] sm:$0xff] }
   0xc   :  { %471 = vmatpush.bf16.msra.mxu2 %v873_v6  ;;  %v879_v15 = vld [vmem:[#allocation3 + $0xe0] sm:$0xff]  ;;  %v878_v19 = vld [vmem:[#allocation3 + $0xd8] sm:$0xff]  ;;  %v869_v22 = vld [vmem:[#allocation3 + $0x90] sm:$0xff] }
   0xd   :  { %484 = vmatpush.bf16.msra.mxu3 %v881_v7  ;;  %v877_v23 = vld [vmem:[#allocation3 + $0xd0] sm:$0xff]  ;;  %v852_v24 = vld [vmem:[#allocation3 + $0x8] sm:$0xff]  ;;  %v36_v26 = vld [vmem:[%s1000_s0] sm:$0xff] }
   0xe   :  { %446 = vmatpush.bf16.msra.mxu0 %v856_v8  ;;  %v860_v25 = vld [vmem:[#allocation3 + $0x48] sm:$0xff]  ;;  %v138_v29 = vunpack.c.l.b16 %v36_v26  ;;  %v139_v30 = vunpack.c.h.b16 %v36_v26  ;;  %v851_v32 = vld [vmem:[#allocation3] sm:$0xff]  ;;  %v890_v34 = vld [vmem:[#allocation3 + $0x138] sm:$0xff] }
   0xf   :  { %459 = vmatpush.bf16.msra.mxu1 %v864_v9  ;;  %v868_v27 = vld [vmem:[#allocation3 + $0x88] sm:$0xff]  ;;  %v859_v33 = vld [vmem:[#allocation3 + $0x40] sm:$0xff]  ;;  %v898_v35 = vld [vmem:[#allocation3 + $0x178] sm:$0xff] }
  0x10   :  { %472 = vmatpush.bf16.msra.mxu2 %v872_v10  ;;  %v876_v28 = vld [vmem:[#allocation3 + $0xc8] sm:$0xff]  ;;  %v867_v36 = vld [vmem:[#allocation3 + $0x80] sm:$0xff]  ;;  %v144_v40 = vpack.c.b16 %v138_v29, %v138_v29  ;;  %v145_v41 = vpack.c.b16 %v139_v30, %v139_v30  ;;  %v889_v42 = vld [vmem:[#allocation3 + $0x130] sm:$0xff] }
  0x11   :  { %485 = vmatpush.bf16.msra.mxu3 %v880_v11  ;;  %v37_v31 = vld [vmem:[%s1000_s0 + $0x8] sm:$0xff]  ;;  %v875_v37 = vld [vmem:[#allocation3 + $0xc0] sm:$0xff]  ;;  %v897_v43 = vld [vmem:[#allocation3 + $0x170] sm:$0xff] }
  0x12   :  { %447 = vmatpush.bf16.msra.mxu0 %v855_v12  ;;  %v140_v38 = vunpack.c.l.b16 %v37_v31  ;;  %v141_v39 = vunpack.c.h.b16 %v37_v31  ;;  %v888_v46 = vld [vmem:[#allocation3 + $0x128] sm:$0xff]  ;;  %v887_v48 = vld [vmem:[#allocation3 + $0x120] sm:$0xff]  ;;  %v886_v50 = vld [vmem:[#allocation3 + $0x118] sm:$0xff] }
  0x13   :  { %460 = vmatpush.bf16.msra.mxu1 %v863_v13  ;;  %v896_v47 = vld [vmem:[#allocation3 + $0x168] sm:$0xff]  ;;  %v895_v49 = vld [vmem:[#allocation3 + $0x160] sm:$0xff]  ;;  %v894_v51 = vld [vmem:[#allocation3 + $0x158] sm:$0xff] }
  0x14   :  { %473 = vmatpush.bf16.msra.mxu2 %v871_v14  ;;  %v146_v44 = vpack.c.b16 %v140_v38, %v140_v38  ;;  %v147_v45 = vpack.c.b16 %v141_v39, %v141_v39  ;;  %v885_v52 = vld [vmem:[#allocation3 + $0x110] sm:$0xff]  ;;  %v884_v54 = vld [vmem:[#allocation3 + $0x108] sm:$0xff]  ;;  %v883_v59 = vld [vmem:[#allocation3 + $0x100] sm:$0xff] }
  0x15   :  { %486 = vmatpush.bf16.msra.mxu3 %v879_v15  ;;  %v893_v53 = vld [vmem:[#allocation3 + $0x150] sm:$0xff]  ;;  %v892_v55 = vld [vmem:[#allocation3 + $0x148] sm:$0xff]  ;;  %v891_v60 = vld [vmem:[#allocation3 + $0x140] sm:$0xff] }
  0x16   :  { %448 = vmatpush.bf16.msra.mxu0 %v854_v16  ;;  %v38_v56 = vld [vmem:[%s1000_s0 + $0x10] sm:$0xff]  ;;  %v906_v1 = vld [vmem:[%s1002_s2 + $0x38] sm:$0xff] }
  0x17   :  { %461 = vmatpush.bf16.msra.mxu1 %v862_v17  ;;  %v142_v57 = vunpack.c.l.b16 %v38_v56  ;;  %v143_v58 = vunpack.c.h.b16 %v38_v56  ;;  %v905_v2 = vld [vmem:[%s1002_s2 + $0x30] sm:$0xff] }
  0x18   :  { %474 = vmatpush.bf16.msra.mxu2 %v870_v18 }
  0x19   :  { %487 = vmatpush.bf16.msra.mxu3 %v878_v19  ;;  %v148_v61 = vpack.c.b16 %v142_v57, %v142_v57  ;;  %v149_v62 = vpack.c.b16 %v143_v58, %v143_v58  ;;  %v904_v19 = vld [vmem:[%s1002_s2 + $0x28] sm:$0xff] }
  0x1a   :  { %449 = vmatpush.bf16.msra.mxu0 %v853_v20  ;;  %v903_v20 = vld [vmem:[%s1002_s2 + $0x20] sm:$0xff] }
  0x1b   :  { %462 = vmatpush.bf16.msra.mxu1 %v861_v21  ;;  %v902_v21 = vld [vmem:[%s1002_s2 + $0x18] sm:$0xff] }
  0x1c   :  { %475 = vmatpush.bf16.msra.mxu2 %v869_v22  ;;  %v901_v22 = vld [vmem:[%s1002_s2 + $0x10] sm:$0xff] }
  0x1d   :  { %488 = vmatpush.bf16.msra.mxu3 %v877_v23  ;;  %v900_v23 = vld [vmem:[%s1002_s2 + $0x8] sm:$0xff] }
  0x1e   :  { %450 = vmatpush.bf16.msra.mxu0 %v852_v24  ;;  %v899_v24 = vld [vmem:[%s1002_s2] sm:$0xff] }
  0x1f   :  { %463 = vmatpush.bf16.msra.mxu1 %v860_v25 }
  0x20   :  { %476 = vmatpush.bf16.msra.mxu2 %v868_v27 }
  0x21   :  { %489 = vmatpush.bf16.msra.mxu3 %v876_v28 }
  0x22   :  { %451 = vmatpush.bf16.msra.mxu0 %v851_v32 }
  0x23   :  { %464 = vmatpush.bf16.msra.mxu1 %v859_v33 }
  0x24   :  { %477 = vmatpush.bf16.msra.mxu2 %v867_v36 }
  0x25   :  { %490 = vmatpush.bf16.msra.mxu3 %v875_v37  ;;  %452 = vmatmul.bf16.vlgmr.msra.gmra.mxu0 %v144_v40 }
  0x26   :  { %496 = vmatpush.bf16.msrb.mxu0 %v890_v34  ;;  %465 = vmatmul.bf16.vlgmr.msra.gmra.mxu1 %v145_v41 }
  0x27   :  { %509 = vmatpush.bf16.msrb.mxu1 %v898_v35  ;;  %478 = vmatmul.bf16.vlgmr.msra.gmra.mxu2 %v146_v44 }
  0x28   :  { %491 = vmatmul.bf16.vlgmr.msra.gmra.mxu3 %v147_v45  ;;  %608 = vmatpush.bf16.msrb.mxu2 %v906_v1 }
  0x2a   :  { %497 = vmatpush.bf16.msrb.mxu0 %v889_v42 }
  0x2b   :  { %510 = vmatpush.bf16.msrb.mxu1 %v897_v43 }
  0x2c   :  { %609 = vmatpush.bf16.msrb.mxu2 %v905_v2 }
  0x2e   :  { %498 = vmatpush.bf16.msrb.mxu0 %v888_v46 }
  0x2f   :  { %511 = vmatpush.bf16.msrb.mxu1 %v896_v47 }
  0x30   :  { %610 = vmatpush.bf16.msrb.mxu2 %v904_v19 }
  0x32   :  { %499 = vmatpush.bf16.msrb.mxu0 %v887_v48 }
  0x33   :  { %512 = vmatpush.bf16.msrb.mxu1 %v895_v49 }
  0x34   :  { %611 = vmatpush.bf16.msrb.mxu2 %v903_v20 }
  0x36   :  { %500 = vmatpush.bf16.msrb.mxu0 %v886_v50 }
  0x37   :  { %513 = vmatpush.bf16.msrb.mxu1 %v894_v51 }
  0x38   :  { %612 = vmatpush.bf16.msrb.mxu2 %v902_v21 }
  0x3a   :  { %501 = vmatpush.bf16.msrb.mxu0 %v885_v52 }
  0x3b   :  { %514 = vmatpush.bf16.msrb.mxu1 %v893_v53 }
  0x3c   :  { %613 = vmatpush.bf16.msrb.mxu2 %v901_v22 }
  0x3e   :  { %502 = vmatpush.bf16.msrb.mxu0 %v884_v54 }
  0x3f   :  { %515 = vmatpush.bf16.msrb.mxu1 %v892_v55 }
  0x40   :  { %614 = vmatpush.bf16.msrb.mxu2 %v900_v23 }
  0x42   :  { %503 = vmatpush.bf16.msrb.mxu0 %v883_v59 }
  0x43   :  { %516 = vmatpush.bf16.msrb.mxu1 %v891_v60 }
  0x44   :  { %615 = vmatpush.bf16.msrb.mxu2 %v899_v24 }
  0x45   :  { %504 = vmatmul.bf16.vlgmr.msrb.gmra.mxu0 %v148_v61 }
  0x46   :  { %517 = vmatmul.bf16.vlgmr.msrb.gmra.mxu1 %v149_v62 }
  0xa2   :  { %v453_v63 = vpop.f32.mrf.mxu0 }
  0xa3   :  { %v466_v0 = vpop.f32.mrf.mxu1 }
  0xa4   :  { %v467_v9 = vadd.f32 %v466_v0, %v453_v63 }
  0xaa   :  { %v455_v3 = vpop.f32.mrf.mxu0  ;;  %v479_v5 = vpop.f32.mrf.mxu2 }
  0xab   :  { %v468_v4 = vpop.f32.mrf.mxu1  ;;  %v492_v6 = vpop.f32.mrf.mxu3  ;;  %v480_v10 = vadd.f32 %v479_v5, %v467_v9 }
  0xad   :  { %v493_v11 = vadd.f32 %v492_v6, %v480_v10 }
  0xb2   :  { %v481_v7 = vpop.f32.mrf.mxu2 }
  0xb3   :  { %v494_v8 = vpop.f32.mrf.mxu3 }
  0xc2   :  { %v505_v12 = vpop.f32.mrf.mxu0 }
  0xc3   :  { %v518_v13 = vpop.f32.mrf.mxu1  ;;  %v506_v14 = vadd.f32 %v505_v12, %v493_v11 }
  0xc5   :  { %v519_v15 = vadd.f32 %v518_v13, %v506_v14 }
  0xc7   :  { %v528_v16 = vmul.f32 %v519_v15, %v519_v15 }
  0xc9   :  { %529 = vadd.xlane.f32.xlu0 %v528_v16 }
  0xca   :  { %v507_v17 = vpop.f32.mrf.mxu0 }
  0xcb   :  { %v520_v18 = vpop.f32.mrf.mxu1 }
 0x13c   :  { %v530_v25 = vpop.xlane.xlu0 %529 }
 0x13d   :  { %v531_v26 = vadd.f32 1e-12, %v530_v25 }
 0x13f   :  { %910 = vrsqrt.f32 %v531_v26  ;;  %vm538_vm1 = vweird.f32 %v531_v26 }
 0x145   :  { %v911_v27 = vpop.eup %910 }
 0x146   :  { %v533_v28 = vmul.f32 %v911_v27, %v531_v26  ;;  %vm539_vm0 = vweird.f32 %v911_v27 }
 0x147   :  { %vm540_vm2 = vmor %vm538_vm1, %vm539_vm0 }
 0x148   :  { %v534_v29 = vmul.f32 %v911_v27, %v533_v28 }
 0x14a   :  { %v535_v30 = vmul.f32 0.5, %v534_v29 }
 0x14c   :  { %v536_v31 = vsub.f32 1.5, %v535_v30 }
 0x14e   :  { %v537_v32 = vmul.f32 %v911_v27, %v536_v31 }
 0x150   :  { %v541_v33 = vsel %vm540_vm2, %v911_v27, %v537_v32 }
 0x151   :  { %v542_v34 = vmul.f32 %v541_v33, %v519_v15 }
 0x153   :  { %v543_v35 = vpack.c.bf16 %v542_v34, %v542_v34 }
 0x155   :  { %616 = vmatmul.bf16.vlgmr.msrb.gmra.mxu2 %v543_v35 }
 0x1d8   :  { %v617_v36 = vpop.f32.mrf.mxu2 }
 0x1d9   :  { %621 = vst [vmem:[%s1003_s3] sm:$0xff] %v617_v36 }
 0x1e0   :  { %v619_v37 = vpop.f32.mrf.mxu2 }
 0x1e1   :  { %626 = vsyncpa [#allocation4], 1 }

</bundles_post_ra>
